<compile_context>
chip_gen: v5e
topology: v5e:2x2
jax: 0.10.0
libtpu: 0.0.40
codegen_flags: <defaults>
</compile_context>

<pallas_src>
import math

import jax
import jax.numpy as jnp
from jax.experimental import pallas as pl
from jax.experimental.pallas import tpu as pltpu

_LANES = 128


def _identity_kernel(x_ref, o_ref):
    # Straight VMEM tile copy: full-width vld/vst, no VPU/MXU/XLU work.
    o_ref[...] = x_ref[...]


def _sublane_multiple(dtype) -> int:
    # Packed sublane granularity: 8 rows (32-bit), 16 (16-bit), 32 (8-bit).
    itemsize = jnp.dtype(dtype).itemsize
    return max(8, 32 // max(itemsize, 1))


def _copy_2d(x2):
    """Lane-dense, auto-pipelined 2D copy via pallas_call."""
    rows, cols = x2.shape
    itemsize = jnp.dtype(x2.dtype).itemsize
    sub = _sublane_multiple(x2.dtype)

    # Per-block budget: 4 MiB -> double-buffered in+out = 4 * 4 MiB = 16 MiB,
    # kept legal on every generation by the explicit 32 MiB scoped-VMEM limit.
    MAX_BLOCK_BYTES = 4 * 1024 * 1024
    bytes_per_row = max(cols * itemsize, 1)
    tm = max(1, MAX_BLOCK_BYTES // bytes_per_row)
    if tm >= rows:
        tm = rows                               # single block along rows
    else:
        tm = max(sub, (tm // sub) * sub)        # dtype-aware sublane alignment
        tm = min(tm, rows)

    grid = (pl.cdiv(rows, tm),)
    total_bytes = rows * cols * itemsize

    return pl.pallas_call(
        _identity_kernel,
        out_shape=jax.ShapeDtypeStruct((rows, cols), x2.dtype),
        grid=grid,
        in_specs=[pl.BlockSpec((tm, cols), lambda i: (i, 0))],
        out_specs=pl.BlockSpec((tm, cols), lambda i: (i, 0)),
        # Alias input buffer -> output buffer: no second HBM allocation.
        input_output_aliases={0: 0},
        cost_estimate=pl.CostEstimate(
            flops=0, transcendentals=0, bytes_accessed=2 * total_bytes),
        compiler_params=pltpu.CompilerParams(
            # TODO(synk): on v7x, pltpu.CORE_PARALLEL would shard the row grid
            # across both TensorCores; kept "parallel" here for portability.
            dimension_semantics=("parallel",),
            vmem_limit_bytes=32 << 20,
        ),
    )(x2)


def identity(x):
    """Pallas-backed forward of Identity: same shape/dtype/values as x."""
    orig_shape = x.shape
    total = int(math.prod(orig_shape)) if orig_shape else 1
    if total == 0:
        # Nothing to copy; the tiling math below would degenerate to 0-blocks.
        return x

    if total % _LANES == 0:
        # Lane-dense layout.  Prefer the widest lane width dividing the total:
        # fewer sublane rows -> fewer per-row store/DMA descriptors.
        cols = _LANES
        for cand in (8192, 4096, 2048, 1024, 512, 256):
            if total % cand == 0:
                cols = cand
                break
        rows = total // cols
        out2 = _copy_2d(x.reshape(rows, cols))
        return out2.reshape(orig_shape)

    # Fallback (last-dim / total not lane friendly): flatten, pad to a
    # multiple of 128 so every store is a full unmasked lane-dense vst,
    # copy, then slice the padding off.
    pad = (-total) % _LANES
    flat = jnp.pad(x.reshape(total), (0, pad))
    padded = total + pad
    rows = padded // _LANES
    out2 = _copy_2d(flat.reshape(rows, _LANES))
    return out2.reshape(padded)[:total].reshape(orig_shape)


if __name__ == "__main__":
    # Small feature-map-like input: [B, C, H, W].
    key = jax.random.PRNGKey(0)
    x = jax.random.normal(key, (2, 4, 16, 16), dtype=jnp.float32)

    out = jax.block_until_ready(identity(x))
    assert out.shape == x.shape
    assert out.dtype == x.dtype
    assert bool(jnp.array_equal(out, x))

    # Shape whose total is not a multiple of 128 (exercises the padded path).
    y = jax.random.normal(jax.random.PRNGKey(1), (3, 5, 7), dtype=jnp.float32)
    out_y = jax.block_until_ready(identity(y))
    assert out_y.shape == y.shape
    assert bool(jnp.array_equal(out_y, y))

    # Packed dtype (exercises dtype-aware sublane rounding).
    z = jax.random.normal(jax.random.PRNGKey(2), (2, 8, 32),
                          dtype=jnp.bfloat16)
    out_z = jax.block_until_ready(identity(z))
    assert out_z.dtype == z.dtype
    assert bool(jnp.array_equal(out_z, z))

    print("KERNEL_OK")
</pallas_src>

<mosaic_0001>
module attributes {stable_mosaic.version = 11 : i64} {
  func.func @_identity_kernel(%arg0: i32, %arg1: memref<1x2048xf32, #tpu.memory_space<vmem>>, %arg2: memref<1x2048xf32, #tpu.memory_space<vmem>>) attributes {dimension_semantics = [#tpu.dimension_semantics<parallel>], iteration_bounds = array<i64: 1>, scalar_prefetch = 0 : i64, scratch_operands = 0 : i64, tpu.core_type = #tpu.core_type<tc>, window_params = [{transform_indices = @transform_0, window_bounds = array<i64: 1, 2048>}, {transform_indices = @transform_1, window_bounds = array<i64: 1, 2048>}]} {
    %c0 = arith.constant 0 : index
    %c0_0 = arith.constant 0 : index
    %0 = vector.load %arg1[%c0, %c0_0] : memref<1x2048xf32, #tpu.memory_space<vmem>>, vector<1x2048xf32>
    %c0_1 = arith.constant 0 : index
    %c0_2 = arith.constant 0 : index
    %1 = vector.load %arg2[%c0_1, %c0_2] : memref<1x2048xf32, #tpu.memory_space<vmem>>, vector<1x2048xf32>
    tpu.vector_store %arg2[%c0_1, %c0_2], %0 {strides = array<i32>} : memref<1x2048xf32, #tpu.memory_space<vmem>>, vector<1x2048xf32>,
    return
  }
  func.func @transform_0(%arg0: i32) -> (i32, i32) {
    %c0_i32 = arith.constant 0 : i32
    %c0_i32_0 = arith.constant 0 : i32
    return %arg0, %c0_i32 : i32, i32
  }
  func.func @transform_1(%arg0: i32) -> (i32, i32) {
    %c0_i32 = arith.constant 0 : i32
    %c0_i32_0 = arith.constant 0 : i32
    return %arg0, %c0_i32 : i32, i32
  }
}

</mosaic_0001>

<bundles_post_ra>
// kernel: tpu_custom_call.1
= control target key start
LH: loop header
LB: loop body
LE: loop exit
PB: predicated region body
PF: predicated region fallthrough
CT: control target
= control target key end

     0   :  { %6 = vsyncpa [#allocation3], 0  ;;  %s116_s0 = inlined_call_operand.hbm [shape: f32[1,2048], index: 0, kind: input, shape index: {}, may-alias: {0,1}]   ;;  %s117_s1 = inlined_call_operand.hbm [shape: f32[1,2048], index: 1, kind: output, shape index: {}, may-alias: {0,1}]  }
   0x1   :  { %7 = vsyncpa [#allocation4], 0  ;;  %s13_s8 = sshll.u32 %s116_s0, 4  ;;  %s98_s9 = smov [#allocation2]   ;;  %s14_s8 = int_to_ptr.hbm [resolvable:$true] %s13_s8 }
   0x2   :  { %s15_s10 = sshll.u32 %s98_s9, 4  ;;  %s16_s10 = int_to_ptr.vmem [resolvable:$true] %s15_s10 }
   0x3   :  { %18 = dma.hbm_to_vmem [thread:$0]  %s14_s8, 256, %s16_s10, [#allocation3]  }
   0x4   :  { %94 = dma.done.wait [#allocation3], 256  }
   0x5   :  { %95 = vsyncadd [#allocation3], 4294967040  ;;  %s99_s11 = smov [#allocation5]   ;;  %s34_s15 = sshll.u32 %s117_s1, 4  ;;  %v23_v0 = vld [vmem:[#allocation2] sm:$0xff]  ;;  %v24_v1 = vld [vmem:[#allocation2 + $0x8] sm:$0xff]  ;;  %s35_s15 = int_to_ptr.hbm [resolvable:$true] %s34_s15 }
   0x6   :  { %s32_s12 = sshll.u32 %s99_s11, 4  ;;  %25 = vst [vmem:[#allocation5] sm:$0xff] %v23_v0  ;;  %s33_s12 = int_to_ptr.vmem [resolvable:$true] %s32_s12 }
   0x7   :  { %26 = vst [vmem:[#allocation5 + $0x8] sm:$0xff] %v24_v1 }
   0x8   :  { %37 = dma.vmem_to_hbm [thread:$0]  %s33_s12, 256, %s35_s15, [#allocation4]  }
   0x9   :  { %96 = dma.done.wait [#allocation4], 256  }
   0xa   :  { %97 = vsyncadd [#allocation4], 4294967040 }
   0xb   :  { %42 = vsyncpa [#allocation3], 1 }
   0xc   :  { %43 = vsyncpa [#allocation4], 1 }

</bundles_post_ra>
